<compile_context>
chip_gen: v6e
topology: v6e:2x2x1
jax: 0.10.0
libtpu: 0.0.40
codegen_flags: <defaults>
</compile_context>

<pallas_src>
import functools
import numpy as np
import jax
import jax.numpy as jnp
from jax.experimental import pallas as pl
from jax.experimental.pallas import tpu as pltpu


# ----------------------------------------------------------------------------
# Fused Pallas kernel
# ----------------------------------------------------------------------------
def _utango_fused_kernel(a_ref, x_ref, idx_ref, w_ref, b_ref, wr_ref, br_ref,
                         out_ref,
                         *, gcn_layers, g_b, n_pad, h_pad, m_max, max_context):
    f32 = jnp.float32
    w = w_ref[...]                      # (h_pad, h_pad), matmul dtype (f32 or bf16)
    mdt = w.dtype
    bias = b_ref[...]                   # (1, h_pad) f32
    br = br_ref[...]                    # (1, h_pad) f32

    # ---- One shared X @ W_gcn for the whole per-step graph batch (single big
    #      MXU matmul; leading-dims collapse is layout-free).
    x_all = x_ref[...].reshape(g_b * n_pad, h_pad)
    xw_all = jnp.dot(x_all, w, preferred_element_type=f32)      # (g_b*n_pad, h_pad)

    # ---- Hoisted invariants: gather iota + resize-bias broadcast.
    iota_n = jax.lax.broadcasted_iota(jnp.int32, (m_max, n_pad), 1)
    proj_init = jnp.broadcast_to(br, (m_max, h_pad))

    for gb in range(g_b):                                        # small static unroll
        a = a_ref[gb]                                            # (n_pad, n_pad)
        xw = xw_all[gb * n_pad:(gb + 1) * n_pad, :]              # (n_pad, h_pad)

        # ---- GCN stack.  The reference recomputes the *same* intermediate
        #      layer (its input is always `x`) gcn_layers-1 times; dropout is
        #      identity at inference, so computing it once is exact.
        feat = jnp.maximum(
            jnp.dot(a, xw.astype(mdt), preferred_element_type=f32) + bias, 0.0)
        fw = jnp.dot(feat.astype(mdt), w, preferred_element_type=f32)
        feat = jnp.dot(a, fw.astype(mdt), preferred_element_type=f32) + bias
        feat_m = feat.astype(mdt)

        ids = idx_ref[gb]                                        # (m_max, 1+max_context)

        # ---- "Self" row gather as a one-hot MXU matmul (no scalar loop).
        s_self = (ids[:, 0:1] == iota_n).astype(mdt)             # (m_max, n_pad)
        self_feat = jnp.dot(s_self, feat_m, preferred_element_type=f32)

        # ---- Context gather + resize Linear as  sum_c (S_c @ feat) @ W_c + b.
        #      Index -1 (pad / missing context) -> all-zero one-hot row, i.e.
        #      the reference's torch.zeros(h_size) context padding, for free.
        proj = proj_init
        for c in range(max_context):
            s_c = (ids[:, 1 + c:2 + c] == iota_n).astype(mdt)    # (m_max, n_pad)
            g_c = jnp.dot(s_c, feat_m, preferred_element_type=f32)
            proj = proj + jnp.dot(g_c.astype(mdt), wr_ref[c],
                                  preferred_element_type=f32)

        # Lane-dense (m_max, 128) store.
        out_ref[gb] = (self_feat * proj).astype(out_ref.dtype)


def utango_fused(a_b, x_b, idx, w, b, wr, br,
                 *, gcn_layers, g_b, m_max, max_context):
    num_graphs_pad, n_pad, _ = a_b.shape
    h_pad = x_b.shape[-1]
    assert num_graphs_pad % g_b == 0
    num_blocks = num_graphs_pad // g_b

    kernel = functools.partial(
        _utango_fused_kernel, gcn_layers=gcn_layers, g_b=g_b, n_pad=n_pad,
        h_pad=h_pad, m_max=m_max, max_context=max_context)

    grid_spec = pltpu.PrefetchScalarGridSpec(
        num_scalar_prefetch=0,
        grid=(num_blocks,),
        in_specs=[
            pl.BlockSpec((g_b, n_pad, n_pad), lambda i: (i, 0, 0)),           # A_hat
            pl.BlockSpec((g_b, n_pad, h_pad), lambda i: (i, 0, 0)),           # X
            pl.BlockSpec((g_b, m_max, 1 + max_context), lambda i: (i, 0, 0)), # idx
            pl.BlockSpec((h_pad, h_pad), lambda i: (0, 0)),                   # W_gcn
            pl.BlockSpec((1, h_pad), lambda i: (0, 0)),                       # b_gcn
            pl.BlockSpec((max_context, h_pad, h_pad), lambda i: (0, 0, 0)),   # W_resize
            pl.BlockSpec((1, h_pad), lambda i: (0, 0)),                       # b_resize
        ],
        out_specs=pl.BlockSpec((g_b, m_max, h_pad), lambda i: (i, 0, 0)),
    )

    # Explicit VMEM limit only if the double-buffered per-step working set
    # would exceed the smallest default scoped limit (v5e: 16 MiB).
    itemsize = jnp.dtype(a_b.dtype).itemsize
    per_step = ((g_b * n_pad * n_pad + g_b * n_pad * h_pad) * itemsize
                + g_b * m_max * (1 + max_context) * 4
                + g_b * m_max * h_pad * 4)
    weights = ((h_pad * h_pad + max_context * h_pad * h_pad) * itemsize
               + 2 * h_pad * 4)
    est = 2 * per_step + weights + (4 << 20)
    cp_kwargs = dict(dimension_semantics=("parallel",))  # v7x: split blocks over 2 TCs
    if est > (16 << 20):
        cp_kwargs["vmem_limit_bytes"] = int(min(est, 32 << 20))

    return pl.pallas_call(
        kernel,
        out_shape=jax.ShapeDtypeStruct((num_graphs_pad, m_max, h_pad), jnp.float32),
        grid_spec=grid_spec,
        compiler_params=pltpu.CompilerParams(**cp_kwargs),
    )(a_b, x_b, idx, w, b, wr, br)


# ----------------------------------------------------------------------------
# Host-side glue
# ----------------------------------------------------------------------------
def _round_up(x, m):
    return ((x + m - 1) // m) * m


def normalized_adjacency(edge_index, num_nodes):
    """Dense  D^{-1/2} (A + I) D^{-1/2}  exactly like torch_geometric gcn_norm."""
    src, dst = np.asarray(edge_index[0]), np.asarray(edge_index[1])
    a = np.zeros((num_nodes, num_nodes), np.float32)
    np.add.at(a, (dst, src), 1.0)          # message flows src -> dst
    a += np.eye(num_nodes, dtype=np.float32)
    deg = a.sum(axis=1)
    dis = 1.0 / np.sqrt(np.maximum(deg, 1e-12))
    return (dis[:, None] * a * dis[None, :]).astype(np.float32)


def single_linkage_clusters(x, threshold):
    # TODO(synk): sklearn AgglomerativeClustering defaults to ward linkage; this
    # host-side single-linkage (connected components under the distance
    # threshold) is a stand-in — hierarchical clustering has no Pallas equivalent.
    n = x.shape[0]
    parent = list(range(n))

    def find(a):
        while parent[a] != a:
            parent[a] = parent[parent[a]]
            a = parent[a]
        return a

    for i in range(n):
        for j in range(i + 1, n):
            if np.linalg.norm(x[i] - x[j]) < threshold:
                ri, rj = find(i), find(j)
                if ri != rj:
                    parent[rj] = ri
    remap, labels = {}, []
    for i in range(n):
        r = find(i)
        if r not in remap:
            remap[r] = len(remap)
        labels.append(remap[r])
    return np.asarray(labels, dtype=np.int64)


def _prepare_batch(input_data, *, h_size, h_pad, max_context, g_b, matmul_dtype):
    num_graphs = len(input_data)
    num_graphs_pad = _round_up(num_graphs, g_b)
    n_max = max(int(np.asarray(d["x"]).shape[0]) for d in input_data)
    n_pad = _round_up(max(n_max, 8), 8)

    per_graph_labels, m_counts = [], []
    for d in input_data:
        rows = []
        for i, lab in enumerate(d["y"]):
            if lab != 0:
                rows.append((i, [int(t) for t in lab[:max_context]]))
        per_graph_labels.append(rows)
        m_counts.append(len(rows))
    m_max = _round_up(max(1, max(m_counts)), 8)

    a_b = np.zeros((num_graphs_pad, n_pad, n_pad), np.float32)
    x_b = np.zeros((num_graphs_pad, n_pad, h_pad), np.float32)
    # Column 0 = self node index, columns 1.. = context indices.
    # -1 == "no node": the one-hot gather then yields an all-zero row.
    idx = np.full((num_graphs_pad, m_max, 1 + max_context), -1, np.int32)

    for gi, d in enumerate(input_data):
        x = np.asarray(d["x"], np.float32)
        n = x.shape[0]
        a_b[gi, :n, :n] = normalized_adjacency(d["edge_index"], n)
        x_b[gi, :n, :h_size] = x[:, :h_size]
        for mi, (node_i, ctx) in enumerate(per_graph_labels[gi]):
            idx[gi, mi, 0] = node_i
            for ci, cval in enumerate(ctx):
                idx[gi, mi, 1 + ci] = cval

    return (jnp.asarray(a_b, matmul_dtype), jnp.asarray(x_b, matmul_dtype),
            jnp.asarray(idx), n_pad, m_max, m_counts)


def _pad_params(params, *, h_size, h_pad, max_context, matmul_dtype):
    w_gcn, b_gcn, w_resize, b_resize, _ = params
    w_pad = np.zeros((h_pad, h_pad), np.float32)
    w_pad[:h_size, :h_size] = np.asarray(w_gcn)
    b_pad = np.zeros((1, h_pad), np.float32)
    b_pad[:, :h_size] = np.asarray(b_gcn).reshape(1, h_size)
    wr = np.asarray(w_resize)                       # (max_context*h_size, h_size)
    wr_pad = np.zeros((max_context, h_pad, h_pad), np.float32)
    for c in range(max_context):
        wr_pad[c, :h_size, :h_size] = wr[c * h_size:(c + 1) * h_size, :]
    br_pad = np.zeros((1, h_pad), np.float32)
    br_pad[:, :h_size] = np.asarray(b_resize).reshape(1, h_size)
    return (jnp.asarray(w_pad, matmul_dtype), jnp.asarray(b_pad),
            jnp.asarray(wr_pad, matmul_dtype), jnp.asarray(br_pad))


def utango_forward(input_data, params, *, h_size, max_context, gcn_layers,
                   matmul_dtype=jnp.float32):
    # matmul_dtype=jnp.bfloat16 is recommended on v6e/v7x (MXU-native) once the
    # clustering-threshold tolerance has been validated; default is f32 to
    # match the PyTorch reference numerics.
    if gcn_layers < 2:
        raise ValueError("reference UTango.forward requires gcn_layers >= 2")
    threshold_param = params[4]
    h_pad = _round_up(h_size, 128)
    num_graphs = len(input_data)
    # Graphs per grid step; keep >= 2 grid steps when possible so both v7x
    # TensorCores get work.
    g_b = max(1, min(8, num_graphs // 2))

    (a_b, x_b, idx, _n_pad, m_max, m_counts) = _prepare_batch(
        input_data, h_size=h_size, h_pad=h_pad, max_context=max_context,
        g_b=g_b, matmul_dtype=matmul_dtype)
    w_pad, b_pad, wr_pad, br_pad = _pad_params(
        params, h_size=h_size, h_pad=h_pad, max_context=max_context,
        matmul_dtype=matmul_dtype)

    # One fused kernel launch for all graphs.
    rep = utango_fused(a_b, x_b, idx, w_pad, b_pad, wr_pad, br_pad,
                       gcn_layers=gcn_layers, g_b=g_b, m_max=m_max,
                       max_context=max_context)

    # Single device->host sync for the whole batch.
    rep_np = np.asarray(jax.block_until_ready(rep))[:num_graphs, :, :h_size]

    threshold = float(1.0 / (1.0 + np.exp(-float(np.asarray(threshold_param)[0]))))

    pre_clu = []
    for gi in range(num_graphs):
        m = m_counts[gi]
        if m == 0:
            pre_clu.append(np.zeros(0))
        elif m == 1:
            pre_clu.append(np.zeros(1))
        else:
            pre_clu.append(single_linkage_clusters(rep_np[gi, :m], threshold))
    return pre_clu


# ----------------------------------------------------------------------------
# Main
# ----------------------------------------------------------------------------
if __name__ == "__main__":
    H_SIZE = 32
    MAX_CONTEXT = 4
    GCN_LAYERS = 2
    N_NODES = 16

    key = jax.random.PRNGKey(0)
    k_w, k_wr, k_x1, k_x2 = jax.random.split(key, 4)

    # Parameters (deterministic, synthetic).
    w_gcn = (jax.random.normal(k_w, (H_SIZE, H_SIZE), jnp.float32)
             * (1.0 / np.sqrt(H_SIZE)))
    b_gcn = jnp.zeros((1, H_SIZE), jnp.float32)
    w_resize = (jax.random.normal(k_wr, (H_SIZE * MAX_CONTEXT, H_SIZE),
                                  jnp.float32)
                * (1.0 / np.sqrt(H_SIZE * MAX_CONTEXT)))
    b_resize = jnp.zeros((1, H_SIZE), jnp.float32)
    threshold_param = jnp.zeros((1,), jnp.float32)
    params = (w_gcn, b_gcn, w_resize, b_resize, threshold_param)

    # Two small synthetic graphs (ring topology).
    def ring_edges(n):
        src = list(range(n)) + [(i + 1) % n for i in range(n)]
        dst = [(i + 1) % n for i in range(n)] + list(range(n))
        return np.stack([np.array(src), np.array(dst)])

    labels1 = [0] * N_NODES
    labels1[2] = [0, 1, 3]
    labels1[5] = [4, 6]
    labels1[7] = [6, 8, 9, 10, 11]   # truncated at max_context (reference semantics)
    labels1[12] = [11, 13]

    labels2 = [0] * N_NODES
    labels2[0] = [1, 2]

    input_data = [
        {"x": jax.random.normal(k_x1, (N_NODES, H_SIZE), jnp.float32),
         "y": labels1, "edge_index": ring_edges(N_NODES)},
        {"x": jax.random.normal(k_x2, (N_NODES, H_SIZE), jnp.float32),
         "y": labels2, "edge_index": ring_edges(N_NODES)},
    ]

    result = utango_forward(input_data, params,
                            h_size=H_SIZE, max_context=MAX_CONTEXT,
                            gcn_layers=GCN_LAYERS)
    for labels in result:
        _ = np.asarray(labels)
    print("KERNEL_OK")
</pallas_src>

<mosaic_0001>
module attributes {stable_mosaic.version = 11 : i64} {
  func.func @_utango_fused_kernel(%arg0: i32, %arg1: memref<1x16x16xf32, #tpu.memory_space<vmem>>, %arg2: memref<1x16x128xf32, #tpu.memory_space<vmem>>, %arg3: memref<1x8x5xi32, #tpu.memory_space<vmem>>, %arg4: memref<128x128xf32, #tpu.memory_space<vmem>>, %arg5: memref<1x128xf32, #tpu.memory_space<vmem>>, %arg6: memref<4x128x128xf32, #tpu.memory_space<vmem>>, %arg7: memref<1x128xf32, #tpu.memory_space<vmem>>, %arg8: memref<1x8x128xf32, #tpu.memory_space<vmem>>) attributes {dimension_semantics = [#tpu.dimension_semantics<parallel>], iteration_bounds = array<i64: 2>, scalar_prefetch = 0 : i64, scratch_operands = 0 : i64, tpu.core_type = #tpu.core_type<tc>, window_params = [{transform_indices = @transform_0, window_bounds = array<i64: 1, 16, 16>}, {transform_indices = @transform_1, window_bounds = array<i64: 1, 16, 128>}, {transform_indices = @transform_2, window_bounds = array<i64: 1, 8, 5>}, {pipeline_mode = #tpu.pipeline_mode<synchronous>, transform_indices = @transform_3, window_bounds = array<i64: 128, 128>}, {pipeline_mode = #tpu.pipeline_mode<synchronous>, transform_indices = @transform_4, window_bounds = array<i64: 1, 128>}, {pipeline_mode = #tpu.pipeline_mode<synchronous>, transform_indices = @transform_5, window_bounds = array<i64: 4, 128, 128>}, {pipeline_mode = #tpu.pipeline_mode<synchronous>, transform_indices = @transform_6, window_bounds = array<i64: 1, 128>}, {transform_indices = @transform_7, window_bounds = array<i64: 1, 8, 128>}]} {
    %c0 = arith.constant 0 : index
    %c0_0 = arith.constant 0 : index
    %0 = vector.load %arg4[%c0, %c0_0] : memref<128x128xf32, #tpu.memory_space<vmem>>, vector<128x128xf32>
    %c0_1 = arith.constant 0 : index
    %c0_2 = arith.constant 0 : index
    %1 = vector.load %arg5[%c0_1, %c0_2] : memref<1x128xf32, #tpu.memory_space<vmem>>, vector<1x128xf32>
    %c0_3 = arith.constant 0 : index
    %c0_4 = arith.constant 0 : index
    %2 = vector.load %arg7[%c0_3, %c0_4] : memref<1x128xf32, #tpu.memory_space<vmem>>, vector<1x128xf32>
    %c0_5 = arith.constant 0 : index
    %c0_6 = arith.constant 0 : index
    %c0_7 = arith.constant 0 : index
    %3 = vector.load %arg2[%c0_5, %c0_6, %c0_7] : memref<1x16x128xf32, #tpu.memory_space<vmem>>, vector<1x16x128xf32>
    %4 = vector.shape_cast %3 : vector<1x16x128xf32> to vector<16x128xf32>
    %cst = arith.constant dense<0.000000e+00> : vector<16x128xf32>
    %5 = tpu.matmul %4, %0, %cst {dimension_numbers = #tpu.dot_dimension_numbers<[1], [0], [0], [1], [0, 0, 1, 1], [], []>} : vector<16x128xf32>, vector<128x128xf32>, vector<16x128xf32> -> vector<16x128xf32>
    %6 = tpu.iota {dimensions = array<i32: 1>} : vector<8x16xi32>
    %7 = vector.shape_cast %2 : vector<1x128xf32> to vector<1x128xf32>
    %8 = vector.broadcast %7 : vector<1x128xf32> to vector<8x128xf32>
    %c0_8 = arith.constant 0 : index
    %c0_9 = arith.constant 0 : index
    %c0_10 = arith.constant 0 : index
    %9 = vector.load %arg1[%c0_8, %c0_9, %c0_10] : memref<1x16x16xf32, #tpu.memory_space<vmem>>, vector<1x16x16xf32>
    %10 = vector.shape_cast %9 : vector<1x16x16xf32> to vector<16x16xf32>
    %cst_11 = arith.constant dense<0.000000e+00> : vector<16x128xf32>
    %11 = tpu.matmul %10, %5, %cst_11 {dimension_numbers = #tpu.dot_dimension_numbers<[1], [0], [0], [1], [0, 0, 1, 1], [], []>} : vector<16x16xf32>, vector<16x128xf32>, vector<16x128xf32> -> vector<16x128xf32>
    %12 = vector.broadcast %1 : vector<1x128xf32> to vector<16x128xf32>
    %13 = arith.addf %11, %12 : vector<16x128xf32>
    %cst_12 = arith.constant 0.000000e+00 : f32
    %14 = vector.broadcast %cst_12 : f32 to vector<16x128xf32>
    %15 = arith.maximumf %13, %14 : vector<16x128xf32>
    %cst_13 = arith.constant dense<0.000000e+00> : vector<16x128xf32>
    %16 = tpu.matmul %15, %0, %cst_13 {dimension_numbers = #tpu.dot_dimension_numbers<[1], [0], [0], [1], [0, 0, 1, 1], [], []>} : vector<16x128xf32>, vector<128x128xf32>, vector<16x128xf32> -> vector<16x128xf32>
    %cst_14 = arith.constant dense<0.000000e+00> : vector<16x128xf32>
    %17 = tpu.matmul %10, %16, %cst_14 {dimension_numbers = #tpu.dot_dimension_numbers<[1], [0], [0], [1], [0, 0, 1, 1], [], []>} : vector<16x16xf32>, vector<16x128xf32>, vector<16x128xf32> -> vector<16x128xf32>
    %18 = vector.broadcast %1 : vector<1x128xf32> to vector<16x128xf32>
    %19 = arith.addf %17, %18 : vector<16x128xf32>
    %c0_15 = arith.constant 0 : index
    %c0_16 = arith.constant 0 : index
    %c0_17 = arith.constant 0 : index
    %20 = vector.load %arg3[%c0_15, %c0_16, %c0_17] : memref<1x8x5xi32, #tpu.memory_space<vmem>>, vector<1x8x5xi32>
    %21 = vector.shape_cast %20 : vector<1x8x5xi32> to vector<8x5xi32>
    %22 = vector.extract_strided_slice %21 {offsets = [0, 0], sizes = [8, 1], strides = [1, 1]} : vector<8x5xi32> to vector<8x1xi32>
    %23 = vector.broadcast %22 : vector<8x1xi32> to vector<8x16xi32>
    %24 = arith.cmpi eq, %23, %6 : vector<8x16xi32>
    %25 = arith.extui %24 : vector<8x16xi1> to vector<8x16xi32>
    %26 = arith.sitofp %25 : vector<8x16xi32> to vector<8x16xf32>
    %cst_18 = arith.constant dense<0.000000e+00> : vector<8x128xf32>
    %27 = tpu.matmul %26, %19, %cst_18 {dimension_numbers = #tpu.dot_dimension_numbers<[1], [0], [0], [1], [0, 0, 1, 1], [], []>} : vector<8x16xf32>, vector<16x128xf32>, vector<8x128xf32> -> vector<8x128xf32>
    %28 = vector.extract_strided_slice %21 {offsets = [0, 1], sizes = [8, 1], strides = [1, 1]} : vector<8x5xi32> to vector<8x1xi32>
    %29 = vector.broadcast %28 : vector<8x1xi32> to vector<8x16xi32>
    %30 = arith.cmpi eq, %29, %6 : vector<8x16xi32>
    %31 = arith.extui %30 : vector<8x16xi1> to vector<8x16xi32>
    %32 = arith.sitofp %31 : vector<8x16xi32> to vector<8x16xf32>
    %cst_19 = arith.constant dense<0.000000e+00> : vector<8x128xf32>
    %33 = tpu.matmul %32, %19, %cst_19 {dimension_numbers = #tpu.dot_dimension_numbers<[1], [0], [0], [1], [0, 0, 1, 1], [], []>} : vector<8x16xf32>, vector<16x128xf32>, vector<8x128xf32> -> vector<8x128xf32>
    %c0_20 = arith.constant 0 : index
    %c0_21 = arith.constant 0 : index
    %c0_22 = arith.constant 0 : index
    %34 = vector.load %arg6[%c0_20, %c0_21, %c0_22] : memref<4x128x128xf32, #tpu.memory_space<vmem>>, vector<1x128x128xf32>
    %35 = vector.shape_cast %34 : vector<1x128x128xf32> to vector<128x128xf32>
    %cst_23 = arith.constant dense<0.000000e+00> : vector<8x128xf32>
    %36 = tpu.matmul %33, %35, %cst_23 {dimension_numbers = #tpu.dot_dimension_numbers<[1], [0], [0], [1], [0, 0, 1, 1], [], []>} : vector<8x128xf32>, vector<128x128xf32>, vector<8x128xf32> -> vector<8x128xf32>
    %37 = arith.addf %8, %36 : vector<8x128xf32>
    %38 = vector.extract_strided_slice %21 {offsets = [0, 2], sizes = [8, 1], strides = [1, 1]} : vector<8x5xi32> to vector<8x1xi32>
    %39 = vector.broadcast %38 : vector<8x1xi32> to vector<8x16xi32>
    %40 = arith.cmpi eq, %39, %6 : vector<8x16xi32>
    %41 = arith.extui %40 : vector<8x16xi1> to vector<8x16xi32>
    %42 = arith.sitofp %41 : vector<8x16xi32> to vector<8x16xf32>
    %cst_24 = arith.constant dense<0.000000e+00> : vector<8x128xf32>
    %43 = tpu.matmul %42, %19, %cst_24 {dimension_numbers = #tpu.dot_dimension_numbers<[1], [0], [0], [1], [0, 0, 1, 1], [], []>} : vector<8x16xf32>, vector<16x128xf32>, vector<8x128xf32> -> vector<8x128xf32>
    %c1 = arith.constant 1 : index
    %c0_25 = arith.constant 0 : index
    %c0_26 = arith.constant 0 : index
    %44 = vector.load %arg6[%c1, %c0_25, %c0_26] : memref<4x128x128xf32, #tpu.memory_space<vmem>>, vector<1x128x128xf32>
    %45 = vector.shape_cast %44 : vector<1x128x128xf32> to vector<128x128xf32>
    %cst_27 = arith.constant dense<0.000000e+00> : vector<8x128xf32>
    %46 = tpu.matmul %43, %45, %cst_27 {dimension_numbers = #tpu.dot_dimension_numbers<[1], [0], [0], [1], [0, 0, 1, 1], [], []>} : vector<8x128xf32>, vector<128x128xf32>, vector<8x128xf32> -> vector<8x128xf32>
    %47 = arith.addf %37, %46 : vector<8x128xf32>
    %48 = vector.extract_strided_slice %21 {offsets = [0, 3], sizes = [8, 1], strides = [1, 1]} : vector<8x5xi32> to vector<8x1xi32>
    %49 = vector.broadcast %48 : vector<8x1xi32> to vector<8x16xi32>
    %50 = arith.cmpi eq, %49, %6 : vector<8x16xi32>
    %51 = arith.extui %50 : vector<8x16xi1> to vector<8x16xi32>
    %52 = arith.sitofp %51 : vector<8x16xi32> to vector<8x16xf32>
    %cst_28 = arith.constant dense<0.000000e+00> : vector<8x128xf32>
    %53 = tpu.matmul %52, %19, %cst_28 {dimension_numbers = #tpu.dot_dimension_numbers<[1], [0], [0], [1], [0, 0, 1, 1], [], []>} : vector<8x16xf32>, vector<16x128xf32>, vector<8x128xf32> -> vector<8x128xf32>
    %c2 = arith.constant 2 : index
    %c0_29 = arith.constant 0 : index
    %c0_30 = arith.constant 0 : index
    %54 = vector.load %arg6[%c2, %c0_29, %c0_30] : memref<4x128x128xf32, #tpu.memory_space<vmem>>, vector<1x128x128xf32>
    %55 = vector.shape_cast %54 : vector<1x128x128xf32> to vector<128x128xf32>
    %cst_31 = arith.constant dense<0.000000e+00> : vector<8x128xf32>
    %56 = tpu.matmul %53, %55, %cst_31 {dimension_numbers = #tpu.dot_dimension_numbers<[1], [0], [0], [1], [0, 0, 1, 1], [], []>} : vector<8x128xf32>, vector<128x128xf32>, vector<8x128xf32> -> vector<8x128xf32>
    %57 = arith.addf %47, %56 : vector<8x128xf32>
    %58 = vector.extract_strided_slice %21 {offsets = [0, 4], sizes = [8, 1], strides = [1, 1]} : vector<8x5xi32> to vector<8x1xi32>
    %59 = vector.broadcast %58 : vector<8x1xi32> to vector<8x16xi32>
    %60 = arith.cmpi eq, %59, %6 : vector<8x16xi32>
    %61 = arith.extui %60 : vector<8x16xi1> to vector<8x16xi32>
    %62 = arith.sitofp %61 : vector<8x16xi32> to vector<8x16xf32>
    %cst_32 = arith.constant dense<0.000000e+00> : vector<8x128xf32>
    %63 = tpu.matmul %62, %19, %cst_32 {dimension_numbers = #tpu.dot_dimension_numbers<[1], [0], [0], [1], [0, 0, 1, 1], [], []>} : vector<8x16xf32>, vector<16x128xf32>, vector<8x128xf32> -> vector<8x128xf32>
    %c3 = arith.constant 3 : index
    %c0_33 = arith.constant 0 : index
    %c0_34 = arith.constant 0 : index
    %64 = vector.load %arg6[%c3, %c0_33, %c0_34] : memref<4x128x128xf32, #tpu.memory_space<vmem>>, vector<1x128x128xf32>
    %65 = vector.shape_cast %64 : vector<1x128x128xf32> to vector<128x128xf32>
    %cst_35 = arith.constant dense<0.000000e+00> : vector<8x128xf32>
    %66 = tpu.matmul %63, %65, %cst_35 {dimension_numbers = #tpu.dot_dimension_numbers<[1], [0], [0], [1], [0, 0, 1, 1], [], []>} : vector<8x128xf32>, vector<128x128xf32>, vector<8x128xf32> -> vector<8x128xf32>
    %67 = arith.addf %57, %66 : vector<8x128xf32>
    %68 = arith.mulf %27, %67 : vector<8x128xf32>
    %c0_36 = arith.constant 0 : index
    %c0_37 = arith.constant 0 : index
    %c0_38 = arith.constant 0 : index
    %69 = vector.load %arg8[%c0_36, %c0_37, %c0_38] : memref<1x8x128xf32, #tpu.memory_space<vmem>>, vector<1x8x128xf32>
    %70 = vector.shape_cast %69 : vector<1x8x128xf32> to vector<8x128xf32>
    %71 = vector.shape_cast %68 : vector<8x128xf32> to vector<1x8x128xf32>
    tpu.vector_store %arg8[%c0_36, %c0_37, %c0_38], %71 {strides = array<i32>} : memref<1x8x128xf32, #tpu.memory_space<vmem>>, vector<1x8x128xf32>,
    return
  }
  func.func @transform_0(%arg0: i32) -> (i32, i32, i32) {
    %c0_i32 = arith.constant 0 : i32
    %c0_i32_0 = arith.constant 0 : i32
    %c0_i32_1 = arith.constant 0 : i32
    return %arg0, %c0_i32, %c0_i32_0 : i32, i32, i32
  }
  func.func @transform_1(%arg0: i32) -> (i32, i32, i32) {
    %c0_i32 = arith.constant 0 : i32
    %c0_i32_0 = arith.constant 0 : i32
    %c0_i32_1 = arith.constant 0 : i32
    return %arg0, %c0_i32, %c0_i32_0 : i32, i32, i32
  }
  func.func @transform_2(%arg0: i32) -> (i32, i32, i32) {
    %c0_i32 = arith.constant 0 : i32
    %c0_i32_0 = arith.constant 0 : i32
    %c0_i32_1 = arith.constant 0 : i32
    return %arg0, %c0_i32, %c0_i32_0 : i32, i32, i32
  }
  func.func @transform_3(%arg0: i32) -> (i32, i32) {
    %c0_i32 = arith.constant 0 : i32
    %c0_i32_0 = arith.constant 0 : i32
    %c0_i32_1 = arith.constant 0 : i32
    return %c0_i32, %c0_i32_0 : i32, i32
  }
  func.func @transform_4(%arg0: i32) -> (i32, i32) {
    %c0_i32 = arith.constant 0 : i32
    %c0_i32_0 = arith.constant 0 : i32
    %c0_i32_1 = arith.constant 0 : i32
    return %c0_i32, %c0_i32_0 : i32, i32
  }
  func.func @transform_5(%arg0: i32) -> (i32, i32, i32) {
    %c0_i32 = arith.constant 0 : i32
    %c0_i32_0 = arith.constant 0 : i32
    %c0_i32_1 = arith.constant 0 : i32
    %c0_i32_2 = arith.constant 0 : i32
    return %c0_i32, %c0_i32_0, %c0_i32_1 : i32, i32, i32
  }
  func.func @transform_6(%arg0: i32) -> (i32, i32) {
    %c0_i32 = arith.constant 0 : i32
    %c0_i32_0 = arith.constant 0 : i32
    %c0_i32_1 = arith.constant 0 : i32
    return %c0_i32, %c0_i32_0 : i32, i32
  }
  func.func @transform_7(%arg0: i32) -> (i32, i32, i32) {
    %c0_i32 = arith.constant 0 : i32
    %c0_i32_0 = arith.constant 0 : i32
    %c0_i32_1 = arith.constant 0 : i32
    return %arg0, %c0_i32, %c0_i32_0 : i32, i32, i32
  }
}

</mosaic_0001>

<bundles_post_ra>
// kernel: tpu_custom_call.1
= control target key start
LH: loop header
LB: loop body
LE: loop exit
PB: predicated region body
PF: predicated region fallthrough
CT: control target
= control target key end

     0   :  { %s2776_s0 = inlined_call_operand.hbm [shape: f32[2,16,16], index: 0, kind: input, shape index: {}]   ;;  %s2777_s1 = inlined_call_operand.hbm [shape: f32[2,16,128], index: 1, kind: input, shape index: {}]   ;;  %s2778_s2 = inlined_call_operand.vmem [shape: s32[2,8,5], index: 2, kind: input, shape index: {}]   ;;  %s2779_s3 = inlined_call_operand.hbm [shape: f32[128,128], index: 3, kind: input, shape index: {}]   ;;  %s2780_s4 = inlined_call_operand.vmem [shape: f32[1,128], index: 4, kind: input, shape index: {}]   ;;  %s2781_s5 = inlined_call_operand.hbm [shape: f32[4,128,128], index: 5, kind: input, shape index: {}]   ;;  %s2782_s6 = inlined_call_operand.vmem [shape: f32[1,128], index: 6, kind: input, shape index: {}]   ;;  %s2783_s7 = inlined_call_operand.hbm [shape: f32[2,8,128], index: 7, kind: output, shape index: {}]  }
   0x1   :  { %2791 = sst [smem:[#allocation17_spill]] %s2776_s0 }
   0x2   :  { %2792 = sst [smem:[#allocation18_spill]] %s2779_s3 }
   0x3   :  { %2793 = sst [smem:[#allocation19_spill]] %s2781_s5 }
   0x4   :  { %12 = vsyncpa [#allocation3], 0 }
   0x5   :  { %14 = vsyncpa [#allocation3 + $0x1], 0 }
   0x6   :  { %15 = vsyncpa [#allocation6], 0 }
   0x7   :  { %17 = vsyncpa [#allocation6 + $0x1], 0 }
   0x8   :  { %18 = vsyncpa [#allocation9], 0 }
   0x9   :  { %19 = vsyncpa [#allocation4], 0 }
   0xa   :  { %21 = vsyncpa [#allocation4 + $0x1], 0  ;;  %s2368_s24 = smov 0   ;;  %s2370_s25 = smov 0  }
   0xb   :  { %s2372_s26 = smov 0   ;;  %s2374_s27 = smov 0  }
   0xc LB: > { %s2389_s28 = sadd.s32 4294967295, %s2312_s27   ;;  %s1615_s29 = sadd.s32 4294967294, %s2312_s27   ;;  %s2312_s27 = sphi %s2374_s27, %s2818_s27   ;;  %s2308_s26 = sphi %s2372_s26, %s2817_s26   ;;  %s2304_s25 = sphi %s2370_s25, %s2816_s25   ;;  %s2300_s24 = sphi %s2368_s24, %s2815_s24  }
   0xd   : > { %p47_p0 = scmp.ne.s32.totalorder %s2304_s25, %s2300_s24  ;;  %p2788_p1 = scmp.eq.s32.totalorder %s2389_s28, 0 }
   0xe   : > { %p207_p2 = scmp.eq.s32.totalorder %s2389_s28, 1  ;;  %p213_p3 = scmp.eq.s32.totalorder %s1615_s29, 1 }
   0xf   : > { %p2398_p4 = por %p2788_p1, %p47_p0  ;;  %p1616_p5 = scmp.ge.s32.totalorder %s2312_s27, 1 }
  0x10   : > { %p2403_p6 = por %p213_p3, %p47_p0  ;;  %p220_p7 = scmp.lt.s32.totalorder %s2312_s27, 3 }
  0x11   : > { %s2794_s30 = scalar_select %p2398_p4, 1, 0 }
  0x12   : > { %s2795_s8 = scalar_select %p2403_p6, 1, 0 }
  0x13   : > { %p2408_p8 = pnand %p1616_p5, %p220_p7  ;;  %s2314_s10 = smov [#allocation7]  }
  0x14   : > { %s232_s11 = sshll.u32 %s2314_s10, 4  ;;  %s2315_s13 = smov [#allocation8]   ;;  %s233_s11 = int_to_ptr.vmem [resolvable:$true] %s232_s11 }
  0x15   : > { %p2055_p9 = pneg %p2408_p8  ;;  %s248_s14 = sshll.u32 %s2315_s13, 4  ;;  %s249_s14 = int_to_ptr.vmem [resolvable:$true] %s248_s14 }
  0x16   : > { %s2139_s15 = scalar_lea.vmem %s233_s11, 2048  ;;  %p2147_p5 = scmp.lt.s32.totalorder %s233_s11, %s233_s11 }
  0x17   : > { %p2417_p11 = pnand %p2055_p9, %p2788_p1  ;;  %p2140_p13 = scmp.ne.s32.totalorder %s233_s11, %s2139_s15 }
  0x18   : > { %p2148_p7 = scmp.lt.s32.totalorder %s2139_s15, %s2139_s15 }
  0x19   : > { %p2130_p12 = pneg %p2417_p11 }
  0x1a   : > { %p2149_p10 = por %p2148_p7, %p2147_p5 }
  0x1b   : > { %p2142_p0 = pnand %p2140_p13, %p2130_p12 }
  0x1d   : > { %p2143_p3 = pneg %p2142_p0 }
  0x1f   : > { %p2150_p9 = pnand %p2149_p10, %p2143_p3 }
  0x21   : > { %2153 = shalt.err (!%p2150_p9)
}
  0x22   : > { %s2784_s16 = smov 128   ;;  %s2786_s17 = smov 8  }
  0x23   : > { %s2798_s3 = sld [smem:[#allocation18_spill]]  ;;  %s2165_s20 = scalar_lea.vmem %s249_s14, 8192 }
  0x24   : > { %p2166_p13 = scmp.ne.s32.totalorder %s249_s14, %s2165_s20  ;;  %p2173_p10 = scmp.lt.s32.totalorder %s249_s14, %s249_s14 }
  0x25   : > { %p2174_p3 = scmp.lt.s32.totalorder %s2165_s20, %s2165_s20 }
  0x26   : > { %p2168_p0 = pnand %p2166_p13, %p2130_p12 }
  0x27   : > { %p2175_p7 = por %p2174_p3, %p2173_p10 }
  0x28   : > { %p2169_p5 = pneg %p2168_p0 }
  0x29   : > { %2058 = dma.hbm_to_vmem [thread:$0]  (!%p2417_p11), %s2798_s3, 2048, %s233_s11, [#allocation6], %s2784_s16, %s2784_s16, %s2786_s17  }
  0x2a   : > { %p2176_p9 = pnand %p2175_p7, %p2169_p5 }
  0x2c   : > { %2179 = shalt.err (!%p2176_p9)
}
  0x2d   : > { %s2799_s5 = sld [smem:[#allocation19_spill]]  ;;  %s2446_s23 = sadd.s32 1, %s2312_s27  }
  0x2e   : > { %s34_s29 = sadd.s32 1, %s2308_s26  ;;  %s31_s10 = ssub.s32 %s2312_s27, %s2446_s23 }
  0x2f   : > { %p41_p12 = scmp.ne.s32.totalorder %s2308_s26, %s2304_s25  ;;  %p32_p13 = scmp.eq.s32.totalorder %s31_s10, 0 }
  0x30   : > { %p42_p0 = scmp.eq.s32.totalorder %s2312_s27, 0  ;;  %p2075_p10 = scmp.lt.s32.totalorder %s2312_s27, 2 }
  0x31   : > { %p2456_p5 = por %p207_p2, %p41_p12  ;;  %s265_s13 = sand.u32 1, %s2308_s26  }
  0x32   : > { %s2462_s12 = scalar_select %p32_p13, %s2308_s26, %s34_s29  }
  0x33   : > { %2061 = dma.hbm_to_vmem [thread:$0]  (!%p2417_p11), %s2799_s5, 8192, %s249_s14, [#allocation9], %s2784_s16, %s2784_s16, %s2786_s17  }
  0x34   : > { %s2800_s11 = scalar_select %p2456_p5, 1, 0 }
  0x35   : > { %2801 = sst [smem:[#allocation16_spill]] %s2462_s12  ;;  %p43_p3 = por %p42_p0, %p41_p12 }
  0x36   : > { %s1620_s15 = sshll.u32 %s265_s13, 4  ;;  %s1653_s14 = sshll.u32 %s2312_s27, 8 }
  0x37   : > { %s2802_s0 = sld [smem:[#allocation17_spill]]  ;;  %s269_s21 = scalar_lea.vmem [#allocation2], %s1620_s15 }
  0x38   : > { %s276_s22 = sshll.u32 %s269_s21, 4  ;;  %p2473_p2 = pnand %p2075_p10, %p43_p3  ;;  %s2471_s22 = int_to_ptr.vmem [resolvable:$true] %s276_s22 }
  0x39   : > { %s2480_s17 = scalar_lea.hbm %s2777_s1, %s1653_s14  ;;  %s290_s18 = scalar_lea.vmem [#allocation5], %s1620_s15 }
  0x3a   : > { %s2482_s19 = sshll.u32 %s290_s18, 4  ;;  %s2484_s3 = scalar_lea.sflag [#allocation3], %s265_s13  ;;  %s2515_s19 = int_to_ptr.vmem [resolvable:$true] %s2482_s19 }
  0x3b   : > { %p2182_p7 = pneg %p2473_p2 }
  0x3d   : > { %s2469_s20 = scalar_lea.hbm %s2802_s0, %s1653_s14  ;;  %s2185_s16 = scalar_lea.hbm %s2802_s0, 512 }
  0x3e   : > { %s2180_s5 = scalar_lea.hbm %s2469_s20, 256  ;;  %p2186_p13 = scmp.lt.s32.totalorder %s2469_s20, %s2802_s0 }
  0x3f   : > { %p2181_p11 = scmp.ne.s32.totalorder %s2469_s20, %s2180_s5  ;;  %p2187_p0 = scmp.lt.s32.totalorder %s2185_s16, %s2180_s5 }
  0x41   : > { %p2183_p9 = pnand %p2182_p7, %p2181_p11  ;;  %p2188_p10 = por %p2187_p0, %p2186_p13 }
  0x43   : > { %p2184_p12 = pneg %p2183_p9 }
  0x45   : > { %p2189_p3 = pnand %p2188_p10, %p2184_p12 }
  0x47   : > { %2192 = shalt.err (!%p2189_p3)
}
  0x48   : > { %s2193_s13 = scalar_lea.vmem %s2471_s22, 256  ;;  %s2318_s12 = smov [#allocation2]  }
  0x49   : > { %p2194_p1 = scmp.ne.s32.totalorder %s2471_s22, %s2193_s13  ;;  %s2198_s15 = sshll.u32 %s2318_s12, 4  ;;  %s2199_s15 = int_to_ptr.vmem [resolvable:$false] %s2198_s15 }
  0x4a   : > { %s2200_s18 = scalar_lea.vmem %s2199_s15, 512  ;;  %p2201_p6 = scmp.lt.s32.totalorder %s2471_s22, %s2199_s15 }
  0x4b   : > { %p2196_p11 = pnand %p2194_p1, %p2182_p7  ;;  %p2202_p5 = scmp.lt.s32.totalorder %s2200_s18, %s2193_s13 }
  0x4d   : > { %p2197_p9 = pneg %p2196_p11  ;;  %p2203_p4 = por %p2202_p5, %p2201_p6 }
  0x4f   : > { %p2204_p13 = pnand %p2203_p4, %p2197_p9 }
  0x51   : > { %2207 = shalt.err (!%p2204_p13)
}
  0x52   : > { %s2804_s5 = smov 8   ;;  %s2805_s21 = smov 128  }
  0x53   : > { %2065 = dma.hbm_to_vmem [thread:$0]  (!%p2473_p2), %s2469_s20, 256, %s2471_s22, %s2484_s3, %s2805_s21, %s2805_s21, %s2804_s5  }
  0x54   : > { %s286_s16 = sand.u32 1, %s2312_s27   ;;  %s2208_s14 = scalar_lea.hbm %s2480_s17, 256 }
  0x55   : > { %s287_s29 = scalar_lea.sflag [#allocation6], %s286_s16  ;;  %p2209_p1 = scmp.ne.s32.totalorder %s2480_s17, %s2208_s14 }
  0x56   : > { %s2213_s15 = scalar_lea.hbm %s2777_s1, 512  ;;  %p2214_p5 = scmp.lt.s32.totalorder %s2480_s17, %s2777_s1 }
  0x57   : > { %p2211_p4 = pnand %p2209_p1, %p2182_p7  ;;  %p2215_p12 = scmp.lt.s32.totalorder %s2213_s15, %s2208_s14 }
  0x59   : > { %p2212_p6 = pneg %p2211_p4  ;;  %p2216_p0 = por %p2215_p12, %p2214_p5 }
  0x5b   : > { %p2217_p10 = pnand %p2216_p0, %p2212_p6 }
  0x5d   : > { %2220 = shalt.err (!%p2217_p10)
}
  0x5e   : > { %s2221_s3 = scalar_lea.vmem %s2515_s19, 256  ;;  %s2319_s20 = smov [#allocation5]  }
  0x5f   : > { %p2222_p3 = scmp.ne.s32.totalorder %s2515_s19, %s2221_s3  ;;  %s2226_s22 = sshll.u32 %s2319_s20, 4  ;;  %s2227_s22 = int_to_ptr.vmem [resolvable:$false] %s2226_s22 }
  0x60   : > { %s2228_s16 = scalar_lea.vmem %s2227_s22, 512  ;;  %p2229_p13 = scmp.lt.s32.totalorder %s2515_s19, %s2227_s22 }
  0x61   : > { %p2224_p11 = pnand %p2222_p3, %p2182_p7  ;;  %p2230_p1 = scmp.lt.s32.totalorder %s2228_s16, %s2221_s3 }
  0x63   : > { %p2225_p9 = pneg %p2224_p11  ;;  %p2231_p4 = por %p2230_p1, %p2229_p13 }
  0x65   : > { %p2232_p5 = pnand %p2231_p4, %p2225_p9 }
  0x67   : > { %2235 = shalt.err (!%p2232_p5)
}
  0x68   : > { %2068 = dma.hbm_to_vmem [thread:$0]  (!%p2473_p2), %s2480_s17, 256, %s2515_s19, %s287_s29, %s2805_s21, %s2805_s21, %s2804_s5  }
  0x69   : > { %316 = sbr.rel (%p2408_p8) target bundleno = 1550 (0x60e), region = 48  ;;  %s2546_s0 = sand.u32 (!%p2408_p8), 1, %s2304_s25  }
  0x6a   : > { %s1627_s14 = sshll.u32 (!%p2408_p8), %s2546_s0, 4  ;;  %s319_s13 = scalar_lea.sflag (!%p2408_p8), [#allocation3], %s2546_s0 }
  0x6b   : > { %s2550_s12 = scalar_lea.vmem (!%p2408_p8), [#allocation2], %s1627_s14  ;;  %p2806_p7 = scmp.ne.s32.totalorder (!%p2408_p8), %s2794_s30, 0 }
  0x6e   : > { %2279 = dma.done.wait (%p2806_p7), %s319_s13, 256  }
  0x6f   : > { %2281 = vsyncadd (%p2806_p7), %s319_s13, 4294967040  ;;  %s327_s17 = sand.u32 1, %s2389_s28   ;;  %s2557_s10 = scalar_lea.vmem [#allocation5], %s1627_s14 }
  0x70   : > { %s328_s9 = scalar_lea.sflag [#allocation6], %s327_s17 }
  0x71   : > { %2283 = dma.done.wait (%p2806_p7), %s328_s9, 256  }
  0x72   : > { %2285 = vsyncadd (%p2806_p7), %s328_s9, 4294967040  ;;  %p2807_p8 = scmp.eq.s32.totalorder %s2389_s28, 0 }
  0x74   : > { %2287 = dma.done.wait (%p2807_p8), [#allocation6], 2048   ;;  %p2808_p2 = pmov %p2807_p8 }
  0x76   : > { %2289 = vsyncadd (%p2808_p2), [#allocation6], 4294965248  ;;  %p2809_p6 = pmov %p2808_p2 }
  0x77   : > { %p2810_p12 = pmov %p2808_p2 }
  0x78   : > { %2291 = dma.done.wait (%p2809_p6), [#allocation9], 8192  }
  0x79   : > { %2293 = vsyncadd (%p2810_p12), [#allocation9], 4294959104  ;;  %v2571_v0 = vld [vmem:[#allocation7 + $0x78] sm:$0xff]  ;;  %v2573_v1 = vld [vmem:[#allocation7 + $0x70] sm:$0xff]  ;;  %vm494_vm0 = vcmask 130048   ;;  %p379_p0 = scmp.lt.s32.totalorder %s2389_s28, 1  ;;  %v478_v38 = vlaneseq }
  0x7a   : > { %1782 = vmatprep.subr.mxu0 %v2571_v0  ;;  %v2577_v2 = vld [vmem:[#allocation7 + $0x68] sm:$0xff]  ;;  %v2581_v3 = vld [vmem:[#allocation7 + $0x60] sm:$0xff]  ;;  %v394_v5 = vld [vmem:[#allocation7 + $0x58] sm:$0xff]  ;;  %v2320_v29 = vmov 1   ;;  %v2321_v31 = vmov 2   ;;  %v2322_v34 = vmov 0.0  }
  0x7b   : > { %1783 = vmatpush3.msra.mxu0 %v2571_v0  ;;  %v401_v4 = vld [vmem:[%s2557_s10] sm:$0xff]  ;;  %v392_v7 = vld [vmem:[#allocation7 + $0x48] sm:$0xff]  ;;  %v390_v9 = vld [vmem:[#allocation7 + $0x38] sm:$0xff]  ;;  %2122 = vset.pattern.permute.xlu0 %v2320_v29  ;;  %s380_s5 = scalar_select %p379_p0, %s2389_s28, 1  ;;  %vm2323_vm1 = vmmov 0   ;;  %v2324_v35 = vmov 0  }
  0x7c   : > { %1784 = vmatprep.subr.mxu0 %v2573_v1  ;;  %1814 = vmatprep.mubr.f32.mxu0 %v401_v4  ;;  %v393_v6 = vld [vmem:[#allocation7 + $0x50] sm:$0xff]  ;;  %v391_v8 = vld [vmem:[#allocation7 + $0x40] sm:$0xff]  ;;  %v388_v11 = vld [vmem:[#allocation7 + $0x28] sm:$0xff]  ;;  %v2325_v36 = vmov 4   ;;  %v2326_v37 = vmov 3   ;;  %v2617_v40 = vand.u32 127, %v478_v38 }
  0x7d   : > { %1785 = vmatpush3.msra.mxu0 %v2573_v1  ;;  %v389_v10 = vld [vmem:[#allocation7 + $0x30] sm:$0xff]  ;;  %v387_v12 = vld [vmem:[#allocation7 + $0x20] sm:$0xff]  ;;  %v386_v13 = vld [vmem:[#allocation7 + $0x18] sm:$0xff]  ;;  %s1632_s21 = sshll.u32 %s380_s5, 3  ;;  %2124 = vset.pattern.permute.xlu1 %v2324_v35  ;;  %s1631_s22 = sshll.u32 %s2546_s0, 3 }
  0x7e   : > { %1786 = vmatprep.subr.mxu0 %v2577_v2  ;;  %v385_v14 = vld [vmem:[#allocation7 + $0x10] sm:$0xff]  ;;  %v384_v15 = vld [vmem:[#allocation7 + $0x8] sm:$0xff]  ;;  %v383_v16 = vld [vmem:[#allocation7] sm:$0xff]  ;;  %s382_s18 = scalar_lea.vmem %s2778_s2, %s1632_s21  ;;  %s1650_s16 = sshll.u32 %s2389_s28, 7 }
  0x7f   : > { %1787 = vmatpush3.msra.mxu0 %v2577_v2  ;;  %v402_v17 = vld [vmem:[%s2557_s10 + $0x8] sm:$0xff]  ;;  %v486_v18 = vld [vmem:[%s2550_s12] sm:$0xff]  ;;  %s378_s14 = scalar_lea.vmem [#allocation10], %s1631_s22  ;;  %s1489_s9 = scalar_lea.hbm %s2783_s7, %s1650_s16 }
  0x80   : > { %1788 = vmatprep.subr.mxu0 %v2581_v3  ;;  %1821 = vmatprep.mubr.msk.f32.mxu1 %vm494_vm0, %v486_v18  ;;  %v487_v21 = vld [vmem:[%s2550_s12 + $0x8] sm:$0xff]  ;;  %v1634_v22 = vld [vmem:[%s2780_s4] ss:$0 sm:$0xff]  ;;  %v901_v52 = vld [vmem:[#allocation8 + $0x70] sm:$0xff]  ;;  %s1491_s13 = sshll.u32 %s378_s14, 4  ;;  %s1478_s10 = scalar_lea.sflag [#allocation4], %s2546_s0  ;;  %s1492_s13 = int_to_ptr.vmem [resolvable:$true] %s1491_s13 }
  0x81   : > { %1789 = vmatpush3.msra.mxu0 %v2581_v3  ;;  %v728_v30 = vld [vmem:[%s382_s18] sm:$0xff]  ;;  %v902_v49 = vld [vmem:[#allocation8 + $0x78] sm:$0xff]  ;;  %v1068_v53 = vld [vmem:[#allocation8 + $0xf0] sm:$0xff]  ;;  %s2236_s30 = scalar_lea.vmem %s1492_s13, 128  ;;  %p2811_p3 = scmp.ne.s32.totalorder %s2800_s11, 0 }
  0x82   : > { %1790 = vmatprep.subr.mxu0 %v394_v5  ;;  %809 = vperm.xlu0 %2122, %v728_v30   ;;  %v1069_v51 = vld [vmem:[#allocation8 + $0xf8] sm:$0xff]  ;;  %v900_v54 = vld [vmem:[#allocation8 + $0x68] sm:$0xff]  ;;  %v899_v56 = vld [vmem:[#allocation8 + $0x60] sm:$0xff]  ;;  %p2237_p10 = scmp.ne.s32.totalorder %s1492_s13, %s2236_s30  ;;  %s2327_s19 = smov [#allocation10]  }
  0x83   : > { %1791 = vmatpush3.msra.mxu0 %v394_v5  ;;  %730 = vperm.xlu1 %2124, %v728_v30   ;;  %v1067_v55 = vld [vmem:[#allocation8 + $0xe8] sm:$0xff]  ;;  %v1066_v57 = vld [vmem:[#allocation8 + $0xe0] sm:$0xff]  ;;  %v898_v58 = vld [vmem:[#allocation8 + $0x58] sm:$0xff]  ;;  %s2240_s28 = sshll.u32 %s2327_s19, 4  ;;  %s2241_s28 = int_to_ptr.vmem [resolvable:$false] %s2240_s28 }
  0x84   : > { %1792 = vmatprep.subr.mxu0 %v393_v6  ;;  %v1065_v59 = vld [vmem:[#allocation8 + $0xd8] sm:$0xff]  ;;  %v897_v60 = vld [vmem:[#allocation8 + $0x50] sm:$0xff]  ;;  %v896_v62 = vld [vmem:[#allocation8 + $0x48] sm:$0xff]  ;;  %p2238_p11 = pnand %p2237_p10, %p2811_p3  ;;  %s2242_s5 = scalar_lea.vmem %s2241_s28, 256 }
  0x85   : > { %1793 = vmatpush3.msra.mxu0 %v393_v6  ;;  %v1064_v61 = vld [vmem:[#allocation8 + $0xd0] sm:$0xff]  ;;  %v1063_v63 = vld [vmem:[#allocation8 + $0xc8] sm:$0xff]  ;;  %p2243_p13 = scmp.lt.s32.totalorder %s1492_s13, %s2241_s28  ;;  %p2244_p1 = scmp.lt.s32.totalorder %s2242_s5, %s2236_s30 }
  0x86   : > { %1794 = vmatprep.subr.mxu0 %v392_v7  ;;  %2123 = vset.pattern.permute.xlu0 %v2321_v31  ;;  %v893_v4 = vld [vmem:[#allocation8 + $0x30] sm:$0xff]  ;;  %v1234_v31 = vld [vmem:[#allocation8 + $0x168] sm:$0xff]  ;;  %p2239_p9 = pneg %p2238_p11 }
  0x87   : > { %1795 = vmatpush3.msra.mxu0 %v392_v7  ;;  %975 = vperm.xlu0 %2123, %v728_v30   ;;  %v1235_v29 = vld [vmem:[#allocation8 + $0x170] sm:$0xff]  ;;  %v1401_v35 = vld [vmem:[#allocation8 + $0x1e8] sm:$0xff]  ;;  %p2245_p4 = por %p2244_p1, %p2243_p13 }
  0x88   : > { %1796 = vmatprep.subr.mxu0 %v391_v8  ;;  %2125 = vset.pattern.permute.xlu1 %v2326_v37  ;;  %v1400_v37 = vld [vmem:[#allocation8 + $0x1e0] sm:$0xff]  ;;  %v1231_v38 = vld [vmem:[#allocation8 + $0x150] sm:$0xff] }
  0x89   : > { %1797 = vmatpush3.msra.mxu0 %v391_v8  ;;  %1142 = vperm.xlu1 %2125, %v728_v30   ;;  %p2246_p5 = pnand %p2245_p4, %p2239_p9 }
  0x8a   : > { %1798 = vmatprep.subr.mxu0 %v390_v9 }
  0x8b   : > { %1799 = vmatpush3.msra.mxu0 %v390_v9  ;;  %2127 = vset.pattern.permute.xlu0 %v2325_v36 }
  0x8c   : > { %1800 = vmatprep.subr.mxu0 %v389_v10 }
  0x8d   : > { %1801 = vmatpush3.msra.mxu0 %v389_v10  ;;  %2126 = vset.pattern.permute.xlu1 %v2325_v36  ;;  %v1232_v36 = vld [vmem:[#allocation8 + $0x158] sm:$0xff] }
  0x8e   : > { %1802 = vmatprep.subr.mxu0 %v388_v11  ;;  %1309 = vperm.xlu1 %2126, %v728_v30   ;;  %v1403_v30 = vld [vmem:[#allocation8 + $0x1f8] sm:$0xff] }
  0x8f   : > { %1803 = vmatpush3.msra.mxu0 %v388_v11 }
  0x90   : > { %1804 = vmatprep.subr.mxu0 %v387_v12 }
  0x91   : > { %1805 = vmatpush3.msra.mxu0 %v387_v12 }
  0x92   : > { %1806 = vmatprep.subr.mxu0 %v386_v13 }
  0x93   : > { %1807 = vmatpush3.msra.mxu0 %v386_v13 }
  0x94   : > { %1808 = vmatprep.subr.mxu0 %v385_v14 }
  0x95   : > { %1809 = vmatpush3.msra.mxu0 %v385_v14 }
  0x96   : > { %1810 = vmatprep.subr.mxu0 %v384_v15 }
  0x97   : > { %1811 = vmatpush3.msra.mxu0 %v384_v15 }
  0x98   : > { %1812 = vmatprep.subr.mxu0 %v383_v16 }
  0x99   : > { %1813 = vmatpush3.msra.mxu0 %v383_v16 }
  0x9a   : > { %1815 = vmatmul.mubr.f32.vlgmr.msra.gmra.mxu0 %v402_v17  ;;  %v1054_v17 = vld [vmem:[#allocation8 + $0x80] sm:$0xff] }
  0x9b   : > { %1863 = vmatprep.mubr.msk.f32.mxu0 %vm494_vm0, %v486_v18 }
  0xfd   : > { %v810_v39 = vpop.permute.xlu0 %809 }
  0xfe   : > { %vm811_vm2 = vcmp.eq.s32.totalorder %v810_v39, %v2617_v40  ;;  %v731_v48 = vpop.permute.xlu1 %730  ;;  %v1399_v39 = vld [vmem:[#allocation8 + $0x1d8] sm:$0xff] }
  0xff   : > { %v1641_v46 = vsel %vm811_vm2, 1.0, %v2322_v34  ;;  %vm732_vm4 = vcmp.eq.s32.totalorder %v731_v48, %v2617_v40  ;;  %v1226_v48 = vld [vmem:[#allocation8 + $0x128] sm:$0xff] }
 0x100   : > { %v1639_v50 = vsel %vm732_vm4, 1.0, %v2322_v34 }
 0x102   : > { %v976_v43 = vpop.permute.xlu0 %975 }
 0x103   : > { %vm977_vm3 = vcmp.eq.s32.totalorder %v976_v43, %v2617_v40  ;;  %v1397_v43 = vld [vmem:[#allocation8 + $0x1c8] sm:$0xff] }
 0x104   : > { %v1643_v47 = vsel %vm977_vm3, 1.0, %v2322_v34  ;;  %v1143_v18 = vpop.permute.xlu1 %1142 }
 0x105   : > { %vm1144_vm5 = vcmp.eq.s32.totalorder %v1143_v18, %v2617_v40 }
 0x15a   : > { %v1816_v19 = vpop.f32.mrf.mxu0 }
 0x15b   : > { %1817 = vmatprep.subr.mxu1 %v1816_v19 }
 0x15c   : > { %v469_v20 = vpop.f32.mrf.mxu0  ;;  %1818 = vmatpush3.msra.mxu1 %v1816_v19 }
 0x15d   : > { %1819 = vmatprep.subr.mxu1 %v469_v20 }
 0x15e   : > { %1820 = vmatpush3.msra.mxu1 %v469_v20  ;;  %v1310_v20 = vpop.permute.xlu1 %1309 }
 0x15f   : > { %1822 = vmatmul.mubr.msk.f32.vlgmr.msra.gmra.mxu1 %vm494_vm0, %v487_v21  ;;  %1824 = vmatprep.subr.mxu1 %v2571_v0  ;;  %vm1311_vm6 = vcmp.eq.s32.totalorder %v1310_v20, %v2617_v40  ;;  %v1230_v40 = vld [vmem:[#allocation8 + $0x148] sm:$0xff] }
 0x160   : > { %1825 = vmatpush3.msra.mxu1 %v2571_v0  ;;  %v895_v0 = vld [vmem:[#allocation8 + $0x40] sm:$0xff] }
 0x161   : > { %1826 = vmatprep.subr.mxu1 %v2573_v1 }
 0x162   : > { %1827 = vmatpush3.msra.mxu1 %v2573_v1  ;;  %v1062_v1 = vld [vmem:[#allocation8 + $0xc0] sm:$0xff] }
 0x163   : > { %1828 = vmatprep.subr.mxu1 %v2577_v2 }
 0x164   : > { %1829 = vmatpush3.msra.mxu1 %v2577_v2  ;;  %v894_v2 = vld [vmem:[#allocation8 + $0x38] sm:$0xff] }
 0x165   : > { %1830 = vmatprep.subr.mxu1 %v2581_v3 }
 0x166   : > { %1831 = vmatpush3.msra.mxu1 %v2581_v3  ;;  %v1061_v3 = vld [vmem:[#allocation8 + $0xb8] sm:$0xff] }
 0x167   : > { %1832 = vmatprep.subr.mxu1 %v394_v5 }
 0x168   : > { %1833 = vmatpush3.msra.mxu1 %v394_v5  ;;  %v1060_v5 = vld [vmem:[#allocation8 + $0xb0] sm:$0xff] }
 0x169   : > { %1834 = vmatprep.subr.mxu1 %v393_v6 }
 0x16a   : > { %1835 = vmatpush3.msra.mxu1 %v393_v6  ;;  %v892_v6 = vld [vmem:[#allocation8 + $0x28] sm:$0xff] }
 0x16b   : > { %1836 = vmatprep.subr.mxu1 %v392_v7 }
 0x16c   : > { %1837 = vmatpush3.msra.mxu1 %v392_v7  ;;  %v1059_v7 = vld [vmem:[#allocation8 + $0xa8] sm:$0xff] }
 0x16d   : > { %1838 = vmatprep.subr.mxu1 %v391_v8 }
 0x16e   : > { %1839 = vmatpush3.msra.mxu1 %v391_v8  ;;  %v891_v8 = vld [vmem:[#allocation8 + $0x20] sm:$0xff] }
 0x16f   : > { %1840 = vmatprep.subr.mxu1 %v390_v9 }
 0x170   : > { %1841 = vmatpush3.msra.mxu1 %v390_v9  ;;  %v1058_v9 = vld [vmem:[#allocation8 + $0xa0] sm:$0xff] }
 0x171   : > { %1842 = vmatprep.subr.mxu1 %v389_v10 }
 0x172   : > { %1843 = vmatpush3.msra.mxu1 %v389_v10  ;;  %v890_v10 = vld [vmem:[#allocation8 + $0x18] sm:$0xff] }
 0x173   : > { %1844 = vmatprep.subr.mxu1 %v388_v11 }
 0x174   : > { %1845 = vmatpush3.msra.mxu1 %v388_v11  ;;  %v1057_v11 = vld [vmem:[#allocation8 + $0x98] sm:$0xff] }
 0x175   : > { %1846 = vmatprep.subr.mxu1 %v387_v12 }
 0x176   : > { %1847 = vmatpush3.msra.mxu1 %v387_v12  ;;  %v889_v12 = vld [vmem:[#allocation8 + $0x10] sm:$0xff] }
 0x177   : > { %1848 = vmatprep.subr.mxu1 %v386_v13 }
 0x178   : > { %1849 = vmatpush3.msra.mxu1 %v386_v13  ;;  %v1056_v13 = vld [vmem:[#allocation8 + $0x90] sm:$0xff] }
 0x179   : > { %1850 = vmatprep.subr.mxu1 %v385_v14 }
 0x17a   : > { %1851 = vmatpush3.msra.mxu1 %v385_v14  ;;  %v888_v14 = vld [vmem:[#allocation8 + $0x8] sm:$0xff] }
 0x17b   : > { %1852 = vmatprep.subr.mxu1 %v384_v15 }
 0x17c   : > { %1853 = vmatpush3.msra.mxu1 %v384_v15  ;;  %v887_v15 = vld [vmem:[#allocation8] sm:$0xff] }
 0x17d   : > { %1854 = vmatprep.subr.mxu1 %v383_v16 }
 0x17e   : > { %1855 = vmatpush3.msra.mxu1 %v383_v16  ;;  %v1055_v16 = vld [vmem:[#allocation8 + $0x88] sm:$0xff] }
 0x17f   : > { %1873 = vmatprep.subr.mxu1 %v2322_v34 }
 0x21f   : > { %v1823_v23 = vpop.f32.mrf.mxu1 }
 0x220   : > { %v573_v24 = vadd.f32 %v1823_v23, %v1634_v22 }
 0x221   : > { %v567_v25 = vpop.f32.mrf.mxu1 }
 0x222   : > { %v568_v26 = vadd.f32 %v1634_v22, %v567_v25  ;;  %v577_v28 = vmax.f32 %v573_v24, 0.0  ;;  %v1236_v25 = vld [vmem:[#allocation8 + $0x178] sm:$0xff] }
 0x224   : > { %v576_v27 = vmax.f32 %v568_v26, 0.0  ;;  %v1647_v26 = vsel %vm1311_vm6, 1.0, %v2322_v34 }
 0x226   : > { %1856 = vmatprep.mubr.f32.mxu1 %v576_v27 }
 0x227   : > { %1857 = vmatmul.mubr.f32.vlgmr.msra.gmra.mxu1 %v577_v28 }
 0x228   : > { %1877 = vmatprep.mubr.msk.f32.mxu1 %vm2323_vm1, %v2322_v34 }
 0x2e7   : > { %v1858_v32 = vpop.f32.mrf.mxu1 }
 0x2e8   : > { %1859 = vmatprep.subr.mxu0 %v1858_v32 }
 0x2e9   : > { %v644_v33 = vpop.f32.mrf.mxu1  ;;  %1860 = vmatpush3.msra.mxu0 %v1858_v32  ;;  %v1402_v32 = vld [vmem:[#allocation8 + $0x1f0] sm:$0xff] }
 0x2ea   : > { %1861 = vmatprep.subr.mxu0 %v644_v33 }
 0x2eb   : > { %1862 = vmatpush3.msra.mxu0 %v644_v33  ;;  %v1233_v33 = vld [vmem:[#allocation8 + $0x160] sm:$0xff] }
 0x2ec   : > { %1864 = vmatmul.mubr.msk.f32.vlgmr.msra.gmra.mxu0 %vm494_vm0, %v487_v21  ;;  %1866 = vmatprep.subr.mxu0 %v2322_v34  ;;  %v1645_v21 = vsel %vm1144_vm5, 1.0, %v2322_v34 }
 0x2ed   : > { %1870 = vmatprep.mubr.msk.f32.mxu0 %vm2323_vm1, %v2322_v34 }
 0x3ac   : > { %v1865_v41 = vpop.f32.mrf.mxu0 }
 0x3ad   : > { %v2620_v42 = vadd.f32 %v1865_v41, %v1634_v22  ;;  %v1398_v41 = vld [vmem:[#allocation8 + $0x1d0] sm:$0xff] }
 0x3ae   : > { %v719_v44 = vpop.f32.mrf.mxu0 }
 0x3af   : > { %v2622_v45 = vadd.f32 %v1634_v22, %v719_v44  ;;  %1867 = vmatpush3.msra.mxu0 %v2620_v42  ;;  %1874 = vmatpush3.msra.mxu1 %v2620_v42  ;;  %v1228_v44 = vld [vmem:[#allocation8 + $0x138] sm:$0xff] }
 0x3b0   : > { %1868 = vmatprep.subr.mxu0 %v2322_v34  ;;  %1875 = vmatprep.subr.mxu1 %v2322_v34 }
 0x3b1   : > { %1869 = vmatpush3.msra.mxu0 %v2622_v45  ;;  %1876 = vmatpush3.msra.mxu1 %v2622_v45 }
 0x3b2   : > { %1878 = vmatmul.mubr.msk.f32.vlgmr.msra.gmra.mxu1 %vm494_vm0, %v1641_v46  ;;  %1915 = vmatprep.subr.mxu1 %v2322_v34  ;;  %v1227_v46 = vld [vmem:[#allocation8 + $0x130] sm:$0xff] }
 0x3b3   : > { %1916 = vmatpush3.msra.mxu1 %v2620_v42  ;;  %1919 = vmatprep.mubr.msk.f32.mxu1 %vm2323_vm1, %v2322_v34 }
 0x3b4   : > { %1917 = vmatprep.subr.mxu1 %v2322_v34  ;;  %1880 = vmatprep.subr.mxu0 %v2322_v34 }
 0x3b5   : > { %1918 = vmatpush3.msra.mxu1 %v2622_v45  ;;  %1871 = vmatmul.mubr.msk.f32.vlgmr.msra.gmra.mxu0 %vm494_vm0, %v1639_v50  ;;  %v1225_v50 = vld [vmem:[#allocation8 + $0x120] sm:$0xff] }
 0x3b6   : > { %1920 = vmatmul.mubr.msk.f32.vlgmr.msra.gmra.mxu1 %vm494_vm0, %v1643_v47  ;;  %1881 = vmatpush3.msra.mxu0 %v902_v49  ;;  %v1395_v47 = vld [vmem:[#allocation8 + $0x1b8] sm:$0xff]  ;;  %v1394_v49 = vld [vmem:[#allocation8 + $0x1b0] sm:$0xff] }
 0x3b7   : > { %1922 = vmatprep.subr.mxu1 %v2322_v34  ;;  %1882 = vmatprep.subr.mxu0 %v2322_v34 }
 0x3b8   : > { %1923 = vmatpush3.msra.mxu1 %v1069_v51  ;;  %1883 = vmatpush3.msra.mxu0 %v901_v52  ;;  %v1393_v51 = vld [vmem:[#allocation8 + $0x1a8] sm:$0xff]  ;;  %v1224_v52 = vld [vmem:[#allocation8 + $0x118] sm:$0xff] }
 0x3b9   : > { %1924 = vmatprep.subr.mxu1 %v2322_v34  ;;  %1884 = vmatprep.subr.mxu0 %v2322_v34 }
 0x3ba   : > { %1925 = vmatpush3.msra.mxu1 %v1068_v53  ;;  %1885 = vmatpush3.msra.mxu0 %v900_v54  ;;  %v1223_v53 = vld [vmem:[#allocation8 + $0x110] sm:$0xff]  ;;  %v1392_v54 = vld [vmem:[#allocation8 + $0x1a0] sm:$0xff] }
 0x3bb   : > { %1926 = vmatprep.subr.mxu1 %v2322_v34  ;;  %1886 = vmatprep.subr.mxu0 %v2322_v34 }
 0x3bc   : > { %1927 = vmatpush3.msra.mxu1 %v1067_v55  ;;  %1887 = vmatpush3.msra.mxu0 %v899_v56  ;;  %v1222_v55 = vld [vmem:[#allocation8 + $0x108] sm:$0xff]  ;;  %v1391_v56 = vld [vmem:[#allocation8 + $0x198] sm:$0xff] }
 0x3bd   : > { %1928 = vmatprep.subr.mxu1 %v2322_v34  ;;  %1888 = vmatprep.subr.mxu0 %v2322_v34 }
 0x3be   : > { %1929 = vmatpush3.msra.mxu1 %v1066_v57  ;;  %1889 = vmatpush3.msra.mxu0 %v898_v58  ;;  %v1221_v57 = vld [vmem:[#allocation8 + $0x100] sm:$0xff]  ;;  %v1390_v58 = vld [vmem:[#allocation8 + $0x190] sm:$0xff] }
 0x3bf   : > { %1930 = vmatprep.subr.mxu1 %v2322_v34  ;;  %1890 = vmatprep.subr.mxu0 %v2322_v34 }
 0x3c0   : > { %1931 = vmatpush3.msra.mxu1 %v1065_v59  ;;  %1891 = vmatpush3.msra.mxu0 %v897_v60  ;;  %v1389_v59 = vld [vmem:[#allocation8 + $0x188] sm:$0xff]  ;;  %v1388_v60 = vld [vmem:[#allocation8 + $0x180] sm:$0xff] }
 0x3c1   : > { %1932 = vmatprep.subr.mxu1 %v2322_v34  ;;  %1892 = vmatprep.subr.mxu0 %v2322_v34 }
 0x3c2   : > { %1933 = vmatpush3.msra.mxu1 %v1064_v61  ;;  %1893 = vmatpush3.msra.mxu0 %v896_v62  ;;  %v1633_v61 = vld [vmem:[%s2782_s6] ss:$0 sm:$0xff] }
 0x3c3   : > { %1934 = vmatprep.subr.mxu1 %v2322_v34  ;;  %1894 = vmatprep.subr.mxu0 %v2322_v34 }
 0x3c4   : > { %1935 = vmatpush3.msra.mxu1 %v1063_v63  ;;  %1895 = vmatpush3.msra.mxu0 %v895_v0 }
 0x3c5   : > { %1936 = vmatprep.subr.mxu1 %v2322_v34  ;;  %1896 = vmatprep.subr.mxu0 %v2322_v34 }
 0x3c6   : > { %1937 = vmatpush3.msra.mxu1 %v1062_v1  ;;  %1897 = vmatpush3.msra.mxu0 %v894_v2 }
 0x3c7   : > { %1938 = vmatprep.subr.mxu1 %v2322_v34  ;;  %1898 = vmatprep.subr.mxu0 %v2322_v34 }
 0x3c8   : > { %1939 = vmatpush3.msra.mxu1 %v1061_v3  ;;  %1899 = vmatpush3.msra.mxu0 %v893_v4 }
 0x3c9   : > { %1940 = vmatprep.subr.mxu1 %v2322_v34  ;;  %1900 = vmatprep.subr.mxu0 %v2322_v34 }
 0x3ca   : > { %1941 = vmatpush3.msra.mxu1 %v1060_v5  ;;  %1901 = vmatpush3.msra.mxu0 %v892_v6 }
 0x3cb   : > { %1942 = vmatprep.subr.mxu1 %v2322_v34  ;;  %1902 = vmatprep.subr.mxu0 %v2322_v34 }
 0x3cc   : > { %1943 = vmatpush3.msra.mxu1 %v1059_v7  ;;  %1903 = vmatpush3.msra.mxu0 %v891_v8 }
 0x3cd   : > { %1944 = vmatprep.subr.mxu1 %v2322_v34  ;;  %1904 = vmatprep.subr.mxu0 %v2322_v34 }
 0x3ce   : > { %1945 = vmatpush3.msra.mxu1 %v1058_v9  ;;  %1905 = vmatpush3.msra.mxu0 %v890_v10 }
 0x3cf   : > { %1946 = vmatprep.subr.mxu1 %v2322_v34  ;;  %1906 = vmatprep.subr.mxu0 %v2322_v34 }
 0x3d0   : > { %1947 = vmatpush3.msra.mxu1 %v1057_v11  ;;  %1907 = vmatpush3.msra.mxu0 %v889_v12 }
 0x3d1   : > { %1948 = vmatprep.subr.mxu1 %v2322_v34  ;;  %1908 = vmatprep.subr.mxu0 %v2322_v34 }
 0x3d2   : > { %1949 = vmatpush3.msra.mxu1 %v1056_v13  ;;  %1909 = vmatpush3.msra.mxu0 %v888_v14 }
 0x3d3   : > { %1912 = vmatprep.mubr.msk.f32.mxu0 %vm2323_vm1, %v2322_v34  ;;  %1910 = vmatprep.subr.mxu0 %v2322_v34 }
 0x3d4   : > { %1950 = vmatprep.subr.mxu1 %v2322_v34  ;;  %1911 = vmatpush3.msra.mxu0 %v887_v15 }
 0x3d5   : > { %1954 = vmatprep.mubr.msk.f32.mxu1 %vm2323_vm1, %v2322_v34  ;;  %1957 = vmatprep.subr.mxu0 %v2322_v34 }
 0x3d6   : > { %1951 = vmatpush3.msra.mxu1 %v1055_v16 }
 0x3d7   : > { %1952 = vmatprep.subr.mxu1 %v2322_v34 }
 0x3d8   : > { %1953 = vmatpush3.msra.mxu1 %v1054_v17 }
 0x3d9   : > { %1999 = vmatprep.subr.mxu1 %v2322_v34 }
 0x472   : > { %v883_v19 = vpop.f32.mrf.mxu1 }
 0x473   : > { %1913 = vmatmul.mubr.f32.vlgmr.msra.gmra.mxu0 %v883_v19 }
 0x474   : > { %1958 = vmatpush3.msra.mxu0 %v2620_v42  ;;  %v1879_v22 = vpop.f32.mrf.mxu1  ;;  %1961 = vmatprep.mubr.msk.f32.mxu0 %vm2323_vm1, %v2322_v34 }
 0x475   : > { %1959 = vmatprep.subr.mxu0 %v2322_v34  ;;  %v2690_v24 = vpop.f32.mrf.mxu0 }
 0x476   : > { %1960 = vmatpush3.msra.mxu0 %v2622_v45  ;;  %v1049_v23 = vpop.f32.mrf.mxu1 }
 0x477   : > { %1955 = vmatmul.mubr.f32.vlgmr.msra.gmra.mxu1 %v1049_v23  ;;  %1962 = vmatmul.mubr.msk.f32.vlgmr.msra.gmra.mxu0 %vm494_vm0, %v1645_v21  ;;  %v1872_v28 = vpop.f32.mrf.mxu0 }
 0x478   : > { %2000 = vmatpush3.msra.mxu1 %v2620_v42  ;;  %v1921_v27 = vpop.f32.mrf.mxu1  ;;  %2003 = vmatprep.mubr.msk.f32.mxu1 %vm2323_vm1, %v2322_v34  ;;  %v1229_v42 = vld [vmem:[#allocation8 + $0x140] sm:$0xff] }
 0x479   : > { %2001 = vmatprep.subr.mxu1 %v2322_v34  ;;  %1964 = vmatprep.subr.mxu0 %v2322_v34 }
 0x47a   : > { %2002 = vmatpush3.msra.mxu1 %v2622_v45  ;;  %1965 = vmatpush3.msra.mxu0 %v1236_v25  ;;  %v1396_v45 = vld [vmem:[#allocation8 + $0x1c0] sm:$0xff] }
 0x47b   : > { %2004 = vmatmul.mubr.msk.f32.vlgmr.msra.gmra.mxu1 %vm494_vm0, %v1647_v26  ;;  %1966 = vmatprep.subr.mxu0 %v2322_v34 }
 0x47c   : > { %1967 = vmatpush3.msra.mxu0 %v1235_v29  ;;  %2006 = vmatprep.subr.mxu1 %v2322_v34 }
 0x47d   : > { %1968 = vmatprep.subr.mxu0 %v2322_v34  ;;  %2007 = vmatpush3.msra.mxu1 %v1403_v30 }
 0x47e   : > { %1969 = vmatpush3.msra.mxu0 %v1234_v31  ;;  %2008 = vmatprep.subr.mxu1 %v2322_v34 }
 0x47f   : > { %1970 = vmatprep.subr.mxu0 %v2322_v34  ;;  %2009 = vmatpush3.msra.mxu1 %v1402_v32 }
 0x480   : > { %1971 = vmatpush3.msra.mxu0 %v1233_v33  ;;  %2010 = vmatprep.subr.mxu1 %v2322_v34 }
 0x481   : > { %1972 = vmatprep.subr.mxu0 %v2322_v34  ;;  %2011 = vmatpush3.msra.mxu1 %v1401_v35 }
 0x482   : > { %1973 = vmatpush3.msra.mxu0 %v1232_v36  ;;  %2012 = vmatprep.subr.mxu1 %v2322_v34 }
 0x483   : > { %1974 = vmatprep.subr.mxu0 %v2322_v34  ;;  %2013 = vmatpush3.msra.mxu1 %v1400_v37 }
 0x484   : > { %1975 = vmatpush3.msra.mxu0 %v1231_v38  ;;  %2014 = vmatprep.subr.mxu1 %v2322_v34 }
 0x485   : > { %1976 = vmatprep.subr.mxu0 %v2322_v34  ;;  %2015 = vmatpush3.msra.mxu1 %v1399_v39 }
 0x486   : > { %1977 = vmatpush3.msra.mxu0 %v1230_v40  ;;  %2016 = vmatprep.subr.mxu1 %v2322_v34 }
 0x487   : > { %1978 = vmatprep.subr.mxu0 %v2322_v34  ;;  %2017 = vmatpush3.msra.mxu1 %v1398_v41 }
 0x488   : > { %1979 = vmatpush3.msra.mxu0 %v1229_v42  ;;  %2018 = vmatprep.subr.mxu1 %v2322_v34 }
 0x489   : > { %1980 = vmatprep.subr.mxu0 %v2322_v34  ;;  %2019 = vmatpush3.msra.mxu1 %v1397_v43 }
 0x48a   : > { %1981 = vmatpush3.msra.mxu0 %v1228_v44  ;;  %2020 = vmatprep.subr.mxu1 %v2322_v34 }
 0x48b   : > { %1982 = vmatprep.subr.mxu0 %v2322_v34  ;;  %2021 = vmatpush3.msra.mxu1 %v1396_v45 }
 0x48c   : > { %1983 = vmatpush3.msra.mxu0 %v1227_v46  ;;  %2022 = vmatprep.subr.mxu1 %v2322_v34 }
 0x48d   : > { %1984 = vmatprep.subr.mxu0 %v2322_v34  ;;  %2023 = vmatpush3.msra.mxu1 %v1395_v47 }
 0x48e   : > { %1985 = vmatpush3.msra.mxu0 %v1226_v48  ;;  %2024 = vmatprep.subr.mxu1 %v2322_v34 }
 0x48f   : > { %1986 = vmatprep.subr.mxu0 %v2322_v34  ;;  %2025 = vmatpush3.msra.mxu1 %v1394_v49 }
 0x490   : > { %1987 = vmatpush3.msra.mxu0 %v1225_v50  ;;  %2026 = vmatprep.subr.mxu1 %v2322_v34 }
 0x491   : > { %1988 = vmatprep.subr.mxu0 %v2322_v34  ;;  %2027 = vmatpush3.msra.mxu1 %v1393_v51 }
 0x492   : > { %1989 = vmatpush3.msra.mxu0 %v1224_v52  ;;  %2028 = vmatprep.subr.mxu1 %v2322_v34 }
 0x493   : > { %1990 = vmatprep.subr.mxu0 %v2322_v34  ;;  %1996 = vmatprep.mubr.msk.f32.mxu0 %vm2323_vm1, %v2322_v34 }
 0x494   : > { %2038 = vmatprep.mubr.msk.f32.mxu1 %vm2323_vm1, %v2322_v34  ;;  %1991 = vmatpush3.msra.mxu0 %v1223_v53 }
 0x495   : > { %2029 = vmatpush3.msra.mxu1 %v1392_v54  ;;  %1992 = vmatprep.subr.mxu0 %v2322_v34 }
 0x496   : > { %2030 = vmatprep.subr.mxu1 %v2322_v34  ;;  %1993 = vmatpush3.msra.mxu0 %v1222_v55 }
 0x497   : > { %2031 = vmatpush3.msra.mxu1 %v1391_v56  ;;  %1994 = vmatprep.subr.mxu0 %v2322_v34 }
 0x498   : > { %2032 = vmatprep.subr.mxu1 %v2322_v34  ;;  %1995 = vmatpush3.msra.mxu0 %v1221_v57 }
 0x499   : > { %2033 = vmatpush3.msra.mxu1 %v1390_v58 }
 0x49a   : > { %2034 = vmatprep.subr.mxu1 %v2322_v34 }
 0x49b   : > { %2035 = vmatpush3.msra.mxu1 %v1389_v59 }
 0x49c   : > { %2036 = vmatprep.subr.mxu1 %v2322_v34 }
 0x49d   : > { %2037 = vmatpush3.msra.mxu1 %v1388_v60 }
 0x533   : > { %v969_v62 = vpop.f32.mrf.mxu0 }
 0x534   : > { %v973_v0 = vadd.f32 %v1633_v61, %v969_v62 }
 0x535   : > { %v1914_v63 = vpop.f32.mrf.mxu0 }
 0x537   : > { %v1136_v1 = vpop.f32.mrf.mxu1  ;;  %v1216_v2 = vpop.f32.mrf.mxu0 }
 0x538   : > { %v1140_v3 = vadd.f32 %v1136_v1, %v973_v0  ;;  %1997 = vmatmul.mubr.f32.vlgmr.msra.gmra.mxu0 %v1216_v2 }
 0x539   : > { %v1956_v4 = vpop.f32.mrf.mxu1  ;;  %v1963_v5 = vpop.f32.mrf.mxu0 }
 0x53b   : > { %v1383_v6 = vpop.f32.mrf.mxu1 }
 0x53c   : > { %2039 = vmatmul.mubr.f32.vlgmr.msra.gmra.mxu1 %v1383_v6 }
 0x53d   : > { %v2005_v34 = vpop.f32.mrf.mxu1 }
 0x5f8   : > { %v1303_v7 = vpop.f32.mrf.mxu0 }
 0x5f9   : > { %v1307_v9 = vadd.f32 %v1303_v7, %v1140_v3 }
 0x5fa   : > { %v1998_v8 = vpop.f32.mrf.mxu0 }
 0x5fc   : > { %v1470_v10 = vpop.f32.mrf.mxu1 }
 0x5fd   : > { %v1474_v11 = vadd.f32 %v1470_v10, %v1307_v9 }
 0x5fe   : > { %v2040_v12 = vpop.f32.mrf.mxu1 }
 0x5ff   : > { %v1475_v13 = vmul.f32 %v1474_v11, %v2690_v24 }
 0x601   : > { %1476 = vst [vmem:[%s378_s14] sm:$0xff] %v1475_v13 }
 0x602   : > { %2249 = shalt.err (!%p2246_p5)
}
 0x603   : > { %s2250_s21 = scalar_lea.hbm %s1489_s9, 128  ;;  %s2254_s15 = scalar_lea.hbm %s2783_s7, 256 }
 0x604   : > { %p2251_p7 = scmp.ne.s32.totalorder %s1489_s9, %s2250_s21  ;;  %p2255_p6 = scmp.lt.s32.totalorder %s1489_s9, %s2783_s7 }
 0x605   : > { %p2256_p12 = scmp.lt.s32.totalorder %s2254_s15, %s2250_s21 }
 0x606   : > { %p2252_p8 = pnand %p2251_p7, %p2811_p3 }
 0x607   : > { %p2257_p0 = por %p2256_p12, %p2255_p6 }
 0x608   : > { %p2253_p2 = pneg %p2252_p8 }
 0x60a   : > { %p2258_p10 = pnand %p2257_p0, %p2253_p2 }
 0x60c   : > { %2261 = shalt.err (!%p2258_p10)
}
 0x60d   : > { %2053 = dma.vmem_to_hbm [thread:$0]  (%p2811_p3), %s1492_s13, 128, %s1489_s9, %s1478_s10  }
 0x60e PF: > { %s1503_s20 = sand.u32 1, %s2300_s24   ;;  %p2812_p11 = scmp.ne.s32.totalorder %s2795_s8, 0 }
 0x60f   : > { %p2813_p9 = scmp.ge.s32.totalorder %s2312_s27, 2  ;;  %s1504_s22 = scalar_lea.sflag [#allocation4], %s1503_s20 }
 0x611   : > { %p2070_p13 = pnand %p2813_p9, %p2812_p11 }
 0x613   : > { %p2071_p1 = pneg %p2070_p13 }
 0x615   : > { %2295 = dma.done.wait (%p2071_p1), %s1504_s22, 128  }
 0x616   : > { %2297 = vsyncadd (%p2071_p1), %s1504_s22, 4294967168  ;;  %s2814_s16 = sld [smem:[#allocation16_spill]]  ;;  %p24_p4 = scmp.ge.s32.totalorder %s2446_s23, 4  }
 0x617   : > { %s2815_s24 = smov %s2304_s25  ;;  %s2816_s25 = smov %s2308_s26 }
 0x618   : > { %s2818_s27 = smov %s2446_s23  ;;  %26 = sbr.rel (!%p24_p4) target bundleno = 12 (0xc), region = 120 }
 0x61c   : > { %s2817_s26 = smov %s2814_s16 }
 0x61d   :  { %1509 = vsyncpa [#allocation3], 1 }
 0x61e   :  { %1511 = vsyncpa [#allocation3 + $0x1], 1 }
 0x61f   :  { %1512 = vsyncpa [#allocation6], 1 }
 0x620   :  { %1514 = vsyncpa [#allocation6 + $0x1], 1 }
 0x621   :  { %1515 = vsyncpa [#allocation9], 1 }
 0x622   :  { %1516 = vsyncpa [#allocation4], 1 }
 0x623   :  { %1518 = vsyncpa [#allocation4 + $0x1], 1 }

</bundles_post_ra>
